<compile_context>
chip_gen: v7x
topology: tpu7x:2x2x1
jax: 0.10.0
libtpu: 0.0.40
codegen_flags: <defaults>
</compile_context>

<pallas_src>
import functools

import jax
import jax.numpy as jnp
from jax.experimental import pallas as pl
from jax.experimental.pallas import tpu as pltpu


def _round_up(x, m):
    return (x + m - 1) // m * m


def vib_kernel(x_ref, wmu_ref, bmu_ref, wstd_ref, bstd_ref, eps_ref,
               wfc_ref, bfc_ref,
               out_ref, feat_ref, mu_ref, std_ref):
    x = x_ref[...]

    # Backbone Linear, pre-split into mu / std halves (no mid-lane slice).
    mu = jnp.dot(x, wmu_ref[...], preferred_element_type=jnp.float32) + bmu_ref[...]
    pre = jnp.dot(x, wstd_ref[...], preferred_element_type=jnp.float32) + bstd_ref[...]

    # PyTorch F.softplus(pre - 5, beta=1, threshold=20):
    # returns y directly where y > 20, else log1p(exp(y)).  exp/log1p run on
    # the EUP slot; the untaken exp branch can only overflow to +inf, which
    # the where() masks, so no clamp is needed.
    y = pre - 5.0
    std = jnp.where(y > 20.0, y, jnp.log1p(jnp.exp(y)))

    # Reparameterization.
    feat = mu + std * eps_ref[...]

    # fc_layer: N is padded to a multiple of 128 lanes -> unmasked stores.
    out = jnp.dot(feat, wfc_ref[...], preferred_element_type=jnp.float32) + bfc_ref[...]

    out_ref[...] = out.astype(out_ref.dtype)
    feat_ref[...] = feat.astype(feat_ref.dtype)
    mu_ref[...] = mu.astype(mu_ref.dtype)
    std_ref[...] = std.astype(std_ref.dtype)


@functools.partial(jax.jit,
                   static_argnames=("hidden_dim", "output_dim", "batch_tile"))
def vib_forward(x, w_backbone, b_backbone, eps, w_fc, b_fc,
                *, hidden_dim, output_dim, batch_tile=128):
    B, D_in = x.shape
    k = hidden_dim // 2
    assert hidden_dim % 2 == 0
    assert w_backbone.shape == (D_in, hidden_dim)
    assert b_backbone.shape == (1, hidden_dim)
    assert eps.shape == (B, k)
    assert w_fc.shape == (k, output_dim)
    assert b_fc.shape == (1, output_dim)

    # Split the backbone projection so mu / pre-std are produced directly.
    w_mu, w_std = w_backbone[:, :k], w_backbone[:, k:]
    b_mu, b_std = b_backbone[:, :k], b_backbone[:, k:]

    # Lane-dense fc output: zero-pad N up to a multiple of 128.
    n_pad = _round_up(max(output_dim, 1), 128)
    w_fc_p = jnp.zeros((k, n_pad), w_fc.dtype).at[:, :output_dim].set(w_fc)
    b_fc_p = jnp.zeros((1, n_pad), b_fc.dtype).at[:, :output_dim].set(b_fc)

    # Batch tiling: stream batch tiles, keep weights resident.
    tb = min(batch_tile, _round_up(B, 8))
    b_pad = _round_up(B, tb)
    if b_pad != B:
        x = jnp.zeros((b_pad, D_in), x.dtype).at[:B].set(x)
        eps = jnp.zeros((b_pad, k), eps.dtype).at[:B].set(eps)
    grid = (b_pad // tb,)

    in_specs = [
        pl.BlockSpec((tb, D_in), lambda i: (i, 0)),    # x       (streamed)
        pl.BlockSpec((D_in, k), lambda i: (0, 0)),     # w_mu    (resident)
        pl.BlockSpec((1, k), lambda i: (0, 0)),        # b_mu    (resident)
        pl.BlockSpec((D_in, k), lambda i: (0, 0)),     # w_std   (resident)
        pl.BlockSpec((1, k), lambda i: (0, 0)),        # b_std   (resident)
        pl.BlockSpec((tb, k), lambda i: (i, 0)),       # eps     (streamed)
        pl.BlockSpec((k, n_pad), lambda i: (0, 0)),    # w_fc    (resident, padded)
        pl.BlockSpec((1, n_pad), lambda i: (0, 0)),    # b_fc    (resident, padded)
    ]
    out_specs = (
        pl.BlockSpec((tb, n_pad), lambda i: (i, 0)),   # out (padded N)
        pl.BlockSpec((tb, k), lambda i: (i, 0)),       # feat
        pl.BlockSpec((tb, k), lambda i: (i, 0)),       # mu
        pl.BlockSpec((tb, k), lambda i: (i, 0)),       # std
    )
    out_shapes = (
        jax.ShapeDtypeStruct((b_pad, n_pad), jnp.float32),
        jax.ShapeDtypeStruct((b_pad, k), jnp.float32),
        jax.ShapeDtypeStruct((b_pad, k), jnp.float32),
        jax.ShapeDtypeStruct((b_pad, k), jnp.float32),
    )

    # Explicit VMEM budget: resident weights (double-buffered by the pipeline)
    # + double-buffered streaming tiles, with headroom for internal scratch.
    weight_bytes = 4 * (2 * D_in * k + 2 * k + k * n_pad + n_pad)
    tile_bytes = 4 * tb * (D_in + 4 * k + n_pad)
    vmem_limit = int(2 * weight_bytes + 3 * tile_bytes) + (8 << 20)

    out_p, feat_p, mu_p, std_p = pl.pallas_call(
        vib_kernel,
        grid=grid,
        in_specs=in_specs,
        out_specs=out_specs,
        out_shape=out_shapes,
        compiler_params=pltpu.CompilerParams(
            dimension_semantics=("parallel",),
            vmem_limit_bytes=vmem_limit,
        ),
    )(x, w_mu, b_mu, w_std, b_std, eps, w_fc_p, b_fc_p)

    # Strip batch padding and the lane padding of the fc output.
    return (out_p[:B, :output_dim], feat_p[:B], mu_p[:B], std_p[:B])


def vib_reference(x, w_backbone, b_backbone, eps, w_fc, b_fc, hidden_dim):
    k = hidden_dim // 2
    statis = x @ w_backbone + b_backbone
    mu = statis[:, :k]
    std = jax.nn.softplus(statis[:, k:] - 5.0)
    feat = mu + std * eps
    out = feat @ w_fc + b_fc
    return out, feat, mu, std


if __name__ == "__main__":
    B = 256          # batch (2 tiles of 128 -> exercises the grid/pipeline)
    D_IN = 32        # backbone input features
    HIDDEN = 256     # hidden_dim (even); k = 128 (lane-aligned split)
    OUT = 16         # output_dim (lane-padded to 128 inside the wrapper)
    K = HIDDEN // 2

    key = jax.random.PRNGKey(0)
    kx, kwb, kbb, kwf, kbf, keps = jax.random.split(key, 6)

    x = jax.random.normal(kx, (B, D_IN), dtype=jnp.float32)

    # Backbone Linear(D_IN, HIDDEN), stored pre-transposed as (D_IN, HIDDEN).
    # TODO(synk): the wrapped `module` is generic in PyTorch; a Linear backbone
    # stands in for `module(x).feat[-1]` here.
    w_backbone = jax.random.normal(kwb, (D_IN, HIDDEN), dtype=jnp.float32) * 0.1
    b_backbone = jax.random.normal(kbb, (1, HIDDEN), dtype=jnp.float32) * 0.1

    # fc_layer = nn.Linear(K, OUT): torch weight is (OUT, K); pass W.T = (K, OUT).
    w_fc = (jax.random.normal(kwf, (OUT, K), dtype=jnp.float32) * 0.1).T
    b_fc = jax.random.normal(kbf, (1, OUT), dtype=jnp.float32) * 0.1

    # eps ~ N(0, 1): stands in for torch.FloatTensor(std.size()).normal_().
    # TODO(synk): could be generated in-kernel via pltpu.prng_random_bits to
    # save one B*K f32 HBM read; kept as an input for deterministic checking.
    eps = jax.random.normal(keps, (B, K), dtype=jnp.float32)

    out, feat, mu, std = vib_forward(
        x, w_backbone, b_backbone, eps, w_fc, b_fc,
        hidden_dim=HIDDEN, output_dim=OUT, batch_tile=128)
    jax.block_until_ready((out, feat, mu, std))

    ref_out, ref_feat, ref_mu, ref_std = vib_reference(
        x, w_backbone, b_backbone, eps, w_fc, b_fc, HIDDEN)

    assert out.shape == (B, OUT) and feat.shape == (B, K)
    assert mu.shape == (B, K) and std.shape == (B, K)
    assert jnp.allclose(out, ref_out, atol=1e-4, rtol=1e-4)
    assert jnp.allclose(feat, ref_feat, atol=1e-5, rtol=1e-5)
    assert jnp.allclose(mu, ref_mu, atol=1e-5, rtol=1e-5)
    assert jnp.allclose(std, ref_std, atol=1e-5, rtol=1e-5)

    print("KERNEL_OK")
</pallas_src>

<mosaic_0001>
module attributes {stable_mosaic.version = 11 : i64} {
  func.func @vib_kernel(%arg0: i32, %arg1: memref<128x32xf32, #tpu.memory_space<vmem>>, %arg2: memref<32x128xf32, #tpu.memory_space<vmem>>, %arg3: memref<1x128xf32, #tpu.memory_space<vmem>>, %arg4: memref<32x128xf32, #tpu.memory_space<vmem>>, %arg5: memref<1x128xf32, #tpu.memory_space<vmem>>, %arg6: memref<128x128xf32, #tpu.memory_space<vmem>>, %arg7: memref<128x128xf32, #tpu.memory_space<vmem>>, %arg8: memref<1x128xf32, #tpu.memory_space<vmem>>, %arg9: memref<128x128xf32, #tpu.memory_space<vmem>>, %arg10: memref<128x128xf32, #tpu.memory_space<vmem>>, %arg11: memref<128x128xf32, #tpu.memory_space<vmem>>, %arg12: memref<128x128xf32, #tpu.memory_space<vmem>>) attributes {dimension_semantics = [#tpu.dimension_semantics<parallel>], iteration_bounds = array<i64: 2>, scalar_prefetch = 0 : i64, scratch_operands = 0 : i64, tpu.core_type = #tpu.core_type<tc>, window_params = [{transform_indices = @transform_0, window_bounds = array<i64: 128, 32>}, {pipeline_mode = #tpu.pipeline_mode<synchronous>, transform_indices = @transform_1, window_bounds = array<i64: 32, 128>}, {pipeline_mode = #tpu.pipeline_mode<synchronous>, transform_indices = @transform_2, window_bounds = array<i64: 1, 128>}, {pipeline_mode = #tpu.pipeline_mode<synchronous>, transform_indices = @transform_3, window_bounds = array<i64: 32, 128>}, {pipeline_mode = #tpu.pipeline_mode<synchronous>, transform_indices = @transform_4, window_bounds = array<i64: 1, 128>}, {transform_indices = @transform_5, window_bounds = array<i64: 128, 128>}, {pipeline_mode = #tpu.pipeline_mode<synchronous>, transform_indices = @transform_6, window_bounds = array<i64: 128, 128>}, {pipeline_mode = #tpu.pipeline_mode<synchronous>, transform_indices = @transform_7, window_bounds = array<i64: 1, 128>}, {transform_indices = @transform_8, window_bounds = array<i64: 128, 128>}, {transform_indices = @transform_9, window_bounds = array<i64: 128, 128>}, {transform_indices = @transform_10, window_bounds = array<i64: 128, 128>}, {transform_indices = @transform_11, window_bounds = array<i64: 128, 128>}]} {
    %c0 = arith.constant 0 : index
    %c0_0 = arith.constant 0 : index
    %0 = vector.load %arg1[%c0, %c0_0] : memref<128x32xf32, #tpu.memory_space<vmem>>, vector<128x32xf32>
    %c0_1 = arith.constant 0 : index
    %c0_2 = arith.constant 0 : index
    %1 = vector.load %arg2[%c0_1, %c0_2] : memref<32x128xf32, #tpu.memory_space<vmem>>, vector<32x128xf32>
    %cst = arith.constant dense<0.000000e+00> : vector<128x128xf32>
    %2 = tpu.matmul %0, %1, %cst {dimension_numbers = #tpu.dot_dimension_numbers<[1], [0], [0], [1], [0, 0, 1, 1], [], []>} : vector<128x32xf32>, vector<32x128xf32>, vector<128x128xf32> -> vector<128x128xf32>
    %c0_3 = arith.constant 0 : index
    %c0_4 = arith.constant 0 : index
    %3 = vector.load %arg3[%c0_3, %c0_4] : memref<1x128xf32, #tpu.memory_space<vmem>>, vector<1x128xf32>
    %4 = vector.broadcast %3 : vector<1x128xf32> to vector<128x128xf32>
    %5 = arith.addf %2, %4 : vector<128x128xf32>
    %c0_5 = arith.constant 0 : index
    %c0_6 = arith.constant 0 : index
    %6 = vector.load %arg4[%c0_5, %c0_6] : memref<32x128xf32, #tpu.memory_space<vmem>>, vector<32x128xf32>
    %cst_7 = arith.constant dense<0.000000e+00> : vector<128x128xf32>
    %7 = tpu.matmul %0, %6, %cst_7 {dimension_numbers = #tpu.dot_dimension_numbers<[1], [0], [0], [1], [0, 0, 1, 1], [], []>} : vector<128x32xf32>, vector<32x128xf32>, vector<128x128xf32> -> vector<128x128xf32>
    %c0_8 = arith.constant 0 : index
    %c0_9 = arith.constant 0 : index
    %8 = vector.load %arg5[%c0_8, %c0_9] : memref<1x128xf32, #tpu.memory_space<vmem>>, vector<1x128xf32>
    %9 = vector.broadcast %8 : vector<1x128xf32> to vector<128x128xf32>
    %10 = arith.addf %7, %9 : vector<128x128xf32>
    %cst_10 = arith.constant 5.000000e+00 : f32
    %11 = vector.broadcast %cst_10 : f32 to vector<128x128xf32>
    %12 = arith.subf %10, %11 : vector<128x128xf32>
    %cst_11 = arith.constant 2.000000e+01 : f32
    %13 = vector.broadcast %cst_11 : f32 to vector<128x128xf32>
    %14 = arith.cmpf ogt, %12, %13 : vector<128x128xf32>
    %15 = math.exp %12 : vector<128x128xf32>
    %16 = math.log1p %15 : vector<128x128xf32>
    %17 = arith.select %14, %12, %16 : vector<128x128xi1>, vector<128x128xf32>
    %c0_12 = arith.constant 0 : index
    %c0_13 = arith.constant 0 : index
    %18 = vector.load %arg6[%c0_12, %c0_13] : memref<128x128xf32, #tpu.memory_space<vmem>>, vector<128x128xf32>
    %19 = arith.mulf %17, %18 : vector<128x128xf32>
    %20 = arith.addf %5, %19 : vector<128x128xf32>
    %c0_14 = arith.constant 0 : index
    %c0_15 = arith.constant 0 : index
    %21 = vector.load %arg7[%c0_14, %c0_15] : memref<128x128xf32, #tpu.memory_space<vmem>>, vector<128x128xf32>
    %cst_16 = arith.constant dense<0.000000e+00> : vector<128x128xf32>
    %22 = tpu.matmul %20, %21, %cst_16 {dimension_numbers = #tpu.dot_dimension_numbers<[1], [0], [0], [1], [0, 0, 1, 1], [], []>} : vector<128x128xf32>, vector<128x128xf32>, vector<128x128xf32> -> vector<128x128xf32>
    %c0_17 = arith.constant 0 : index
    %c0_18 = arith.constant 0 : index
    %23 = vector.load %arg8[%c0_17, %c0_18] : memref<1x128xf32, #tpu.memory_space<vmem>>, vector<1x128xf32>
    %24 = vector.broadcast %23 : vector<1x128xf32> to vector<128x128xf32>
    %25 = arith.addf %22, %24 : vector<128x128xf32>
    %c0_19 = arith.constant 0 : index
    %c0_20 = arith.constant 0 : index
    %26 = vector.load %arg9[%c0_19, %c0_20] : memref<128x128xf32, #tpu.memory_space<vmem>>, vector<128x128xf32>
    tpu.vector_store %arg9[%c0_19, %c0_20], %25 {strides = array<i32>} : memref<128x128xf32, #tpu.memory_space<vmem>>, vector<128x128xf32>,
    %c0_21 = arith.constant 0 : index
    %c0_22 = arith.constant 0 : index
    %27 = vector.load %arg10[%c0_21, %c0_22] : memref<128x128xf32, #tpu.memory_space<vmem>>, vector<128x128xf32>
    tpu.vector_store %arg10[%c0_21, %c0_22], %20 {strides = array<i32>} : memref<128x128xf32, #tpu.memory_space<vmem>>, vector<128x128xf32>,
    %c0_23 = arith.constant 0 : index
    %c0_24 = arith.constant 0 : index
    %28 = vector.load %arg11[%c0_23, %c0_24] : memref<128x128xf32, #tpu.memory_space<vmem>>, vector<128x128xf32>
    tpu.vector_store %arg11[%c0_23, %c0_24], %5 {strides = array<i32>} : memref<128x128xf32, #tpu.memory_space<vmem>>, vector<128x128xf32>,
    %c0_25 = arith.constant 0 : index
    %c0_26 = arith.constant 0 : index
    %29 = vector.load %arg12[%c0_25, %c0_26] : memref<128x128xf32, #tpu.memory_space<vmem>>, vector<128x128xf32>
    tpu.vector_store %arg12[%c0_25, %c0_26], %17 {strides = array<i32>} : memref<128x128xf32, #tpu.memory_space<vmem>>, vector<128x128xf32>,
    return
  }
  func.func @transform_0(%arg0: i32) -> (i32, i32) {
    %c0_i32 = arith.constant 0 : i32
    %c0_i32_0 = arith.constant 0 : i32
    return %arg0, %c0_i32 : i32, i32
  }
  func.func @transform_1(%arg0: i32) -> (i32, i32) {
    %c0_i32 = arith.constant 0 : i32
    %c0_i32_0 = arith.constant 0 : i32
    %c0_i32_1 = arith.constant 0 : i32
    return %c0_i32, %c0_i32_0 : i32, i32
  }
  func.func @transform_2(%arg0: i32) -> (i32, i32) {
    %c0_i32 = arith.constant 0 : i32
    %c0_i32_0 = arith.constant 0 : i32
    %c0_i32_1 = arith.constant 0 : i32
    return %c0_i32, %c0_i32_0 : i32, i32
  }
  func.func @transform_3(%arg0: i32) -> (i32, i32) {
    %c0_i32 = arith.constant 0 : i32
    %c0_i32_0 = arith.constant 0 : i32
    %c0_i32_1 = arith.constant 0 : i32
    return %c0_i32, %c0_i32_0 : i32, i32
  }
  func.func @transform_4(%arg0: i32) -> (i32, i32) {
    %c0_i32 = arith.constant 0 : i32
    %c0_i32_0 = arith.constant 0 : i32
    %c0_i32_1 = arith.constant 0 : i32
    return %c0_i32, %c0_i32_0 : i32, i32
  }
  func.func @transform_5(%arg0: i32) -> (i32, i32) {
    %c0_i32 = arith.constant 0 : i32
    %c0_i32_0 = arith.constant 0 : i32
    return %arg0, %c0_i32 : i32, i32
  }
  func.func @transform_6(%arg0: i32) -> (i32, i32) {
    %c0_i32 = arith.constant 0 : i32
    %c0_i32_0 = arith.constant 0 : i32
    %c0_i32_1 = arith.constant 0 : i32
    return %c0_i32, %c0_i32_0 : i32, i32
  }
  func.func @transform_7(%arg0: i32) -> (i32, i32) {
    %c0_i32 = arith.constant 0 : i32
    %c0_i32_0 = arith.constant 0 : i32
    %c0_i32_1 = arith.constant 0 : i32
    return %c0_i32, %c0_i32_0 : i32, i32
  }
  func.func @transform_8(%arg0: i32) -> (i32, i32) {
    %c0_i32 = arith.constant 0 : i32
    %c0_i32_0 = arith.constant 0 : i32
    return %arg0, %c0_i32 : i32, i32
  }
  func.func @transform_9(%arg0: i32) -> (i32, i32) {
    %c0_i32 = arith.constant 0 : i32
    %c0_i32_0 = arith.constant 0 : i32
    return %arg0, %c0_i32 : i32, i32
  }
  func.func @transform_10(%arg0: i32) -> (i32, i32) {
    %c0_i32 = arith.constant 0 : i32
    %c0_i32_0 = arith.constant 0 : i32
    return %arg0, %c0_i32 : i32, i32
  }
  func.func @transform_11(%arg0: i32) -> (i32, i32) {
    %c0_i32 = arith.constant 0 : i32
    %c0_i32_0 = arith.constant 0 : i32
    return %arg0, %c0_i32 : i32, i32
  }
}

</mosaic_0001>

<bundles_post_ra>
// kernel: vib_forward.1
= control target key start
LH: loop header
LB: loop body
LE: loop exit
PB: predicated region body
PF: predicated region fallthrough
CT: control target
= control target key end

     0   :  { %s2961_s0 = inlined_call_operand.vmem [shape: f32[256,32], index: 0, kind: input, shape index: {}]   ;;  %s2962_s1 = inlined_call_operand.vmem [shape: f32[32,128], index: 1, kind: input, shape index: {}]   ;;  %s2963_s2 = inlined_call_operand.vmem [shape: f32[1,128], index: 2, kind: input, shape index: {}]   ;;  %s2964_s3 = inlined_call_operand.vmem [shape: f32[32,128], index: 3, kind: input, shape index: {}]   ;;  %s2965_s4 = inlined_call_operand.vmem [shape: f32[1,128], index: 4, kind: input, shape index: {}]   ;;  %s2966_s5 = inlined_call_operand.vmem [shape: f32[256,128], index: 5, kind: input, shape index: {}]   ;;  %s2967_s6 = inlined_call_operand.vmem [shape: f32[128,128], index: 6, kind: input, shape index: {}]   ;;  %s2968_s7 = inlined_call_operand.vmem [shape: f32[1,128], index: 7, kind: input, shape index: {}]   ;;  %s2969_s8 = inlined_call_operand.vmem [shape: f32[256,128], index: 8, kind: output, shape index: {0}]   ;;  %s2970_s9 = inlined_call_operand.hbm [shape: f32[256,128], index: 9, kind: output, shape index: {1}]   ;;  %s2971_s10 = inlined_call_operand.hbm [shape: f32[256,128], index: 10, kind: output, shape index: {2}]   ;;  %s2972_s11 = inlined_call_operand.hbm [shape: f32[256,128], index: 11, kind: output, shape index: {3}]  }
   0x1   :  { %2975 = sst [smem:[#allocation10_spill]] %s2961_s0 }
   0x2   :  { %2976 = sst [smem:[#allocation11_spill]] %s2962_s1 }
   0x3   :  { %2977 = sst [smem:[#allocation12_spill]] %s2963_s2 }
   0x4   :  { %2978 = sst [smem:[#allocation13_spill]] %s2964_s3 }
   0x5   :  { %2979 = sst [smem:[#allocation14_spill]] %s2965_s4 }
   0x6   :  { %17 = vsyncpa [#allocation3], 0 }
   0x7   :  { %19 = vsyncpa [#allocation3 + $0x1], 0 }
   0x8   :  { %20 = vsyncpa [#allocation5], 0 }
   0x9   :  { %22 = vsyncpa [#allocation5 + $0x1], 0  ;;  %s2187_s17 = smov 0   ;;  %s2189_s18 = smov 0  }
   0xa   :  { %s2191_s19 = smov 0   ;;  %s2193_s20 = smov 0  }
   0xb LB: > { %s2208_s21 = sadd.s32 4294967295, %s2120_s20   ;;  %s2973_s22 = sadd.s32 4294967294, %s2120_s20   ;;  %s2120_s20 = sphi %s2193_s20, %s3006_s20   ;;  %s2116_s19 = sphi %s2191_s19, %s3005_s19   ;;  %s2112_s18 = sphi %s2189_s18, %s3004_s18   ;;  %s2108_s17 = sphi %s2187_s17, %s3003_s17  }
   0xc   : > { %s2212_s23 = sadd.s32 1, %s2120_s20   ;;  %s239_s24 = sadd.s32 1, %s2116_s19 }
   0xd   : > { %s236_s25 = ssub.s32 %s2120_s20, %s2212_s23  ;;  %p249_p0 = scmp.ne.s32.totalorder %s2116_s19, %s2112_s18 }
   0xe   : > { %p237_p1 = scmp.eq.s32.totalorder %s236_s25, 0  ;;  %p250_p2 = scmp.eq.s32.totalorder %s2208_s21, 1 }
   0xf   : > { %p255_p3 = scmp.ne.s32.totalorder %s2112_s18, %s2108_s17  ;;  %p256_p4 = scmp.eq.s32.totalorder %s2973_s22, 1 }
  0x10   : > { %s2225_s26 = scalar_select %p237_p1, %s2116_s19, %s239_s24  }
  0x11   : > { %p2227_p5 = por %p250_p2, %p249_p0  ;;  %p2231_p6 = por %p256_p4, %p255_p3 }
  0x12   : > { %2980 = sst [smem:[#allocation9_spill]] %s2225_s26  ;;  %p1552_p7 = scmp.ge.s32.totalorder %s2120_s20, 1 }
  0x13   : > { %p362_p8 = scmp.lt.s32.totalorder %s2120_s20, 3 }
  0x15   : > { %p363_p9 = pnand %p1552_p7, %p362_p8 }
  0x16   : > { %s2983_s3 = sld [smem:[#allocation13_spill]] (!%p363_p9)  ;;  %s1556_s16 = sshll.u32 (!%p363_p9), %s2208_s21, 4  ;;  %vm470_vm0 = vcmask (!%p363_p9), 261120   ;;  %v1092_v28 = vld [vmem:[%s2967_s6] sm:$0xff] (!%p363_p9)  ;;  %v1093_v29 = vld [vmem:[%s2967_s6 + $0x8] sm:$0xff] (!%p363_p9)  ;;  %v1094_v31 = vld [vmem:[%s2967_s6 + $0x10] sm:$0xff] (!%p363_p9) }
  0x17   : > { %366 = sbr.rel (%p363_p9) target bundleno = 556 (0x22c), region = 52  ;;  %p423_p10 = scmp.lt.s32.totalorder (!%p363_p9), %s1556_s16, 31  ;;  %v1835_v30 = vpack.c.bf16 (!%p363_p9), %v1093_v29, %v1092_v28  ;;  %v1095_v32 = vld [vmem:[%s2967_s6 + $0x18] sm:$0xff] (!%p363_p9)  ;;  %v1096_v34 = vld [vmem:[%s2967_s6 + $0x20] sm:$0xff] (!%p363_p9)  ;;  %v1097_v35 = vld [vmem:[%s2967_s6 + $0x28] sm:$0xff] (!%p363_p9) }
  0x18   : > { %s2984_s1 = sld [smem:[#allocation11_spill]] (!%p363_p9)  ;;  %s2985_s0 = sld [smem:[#allocation10_spill]] (!%p363_p9)  ;;  %v1839_v33 = vpack.c.bf16 (!%p363_p9), %v1095_v32, %v1094_v31  ;;  %v1843_v36 = vpack.c.bf16 (!%p363_p9), %v1097_v35, %v1096_v34  ;;  %v1098_v37 = vld [vmem:[%s2967_s6 + $0x30] sm:$0xff] (!%p363_p9)  ;;  %v1099_v38 = vld [vmem:[%s2967_s6 + $0x38] sm:$0xff] (!%p363_p9)  ;;  %v1100_v40 = vld [vmem:[%s2967_s6 + $0x40] sm:$0xff] (!%p363_p9) }
  0x19   : > { %v1847_v39 = vpack.c.bf16 (!%p363_p9), %v1099_v38, %v1098_v37  ;;  %v1101_v41 = vld [vmem:[%s2967_s6 + $0x48] sm:$0xff] (!%p363_p9)  ;;  %v1102_v43 = vld [vmem:[%s2967_s6 + $0x50] sm:$0xff] (!%p363_p9)  ;;  %v1103_v44 = vld [vmem:[%s2967_s6 + $0x58] sm:$0xff] (!%p363_p9)  ;;  %s2974_s30 = sand.u32 (!%p363_p9), 1, %s2112_s18   ;;  %s2986_s4 = sld [smem:[#allocation14_spill]] (!%p363_p9) }
  0x1a   : > { %v1851_v42 = vpack.c.bf16 (!%p363_p9), %v1101_v41, %v1100_v40  ;;  %v1855_v45 = vpack.c.bf16 (!%p363_p9), %v1103_v44, %v1102_v43  ;;  %v1104_v46 = vld [vmem:[%s2967_s6 + $0x60] sm:$0xff] (!%p363_p9)  ;;  %v1105_v47 = vld [vmem:[%s2967_s6 + $0x68] sm:$0xff] (!%p363_p9)  ;;  %v1106_v49 = vld [vmem:[%s2967_s6 + $0x70] sm:$0xff] (!%p363_p9)  ;;  %s2987_s2 = sld [smem:[#allocation12_spill]] (!%p363_p9)  ;;  %s2379_s26 = sshll.u32 (!%p363_p9), %s2974_s30, 7 }
  0x1b   : > { %v1859_v48 = vpack.c.bf16 (!%p363_p9), %v1105_v47, %v1104_v46  ;;  %v1107_v50 = vld [vmem:[%s2967_s6 + $0x78] sm:$0xff] (!%p363_p9)  ;;  %s2394_s24 = scalar_lea.vmem (!%p363_p9), [#allocation4], %s2379_s26  ;;  %s2546_s12 = scalar_lea.vmem (!%p363_p9), [#allocation6], %s2379_s26 }
  0x1c   : > { %v664_v0 = vld [vmem:[%s2983_s3] sm:$0xff] (!%p363_p9)  ;;  %v665_v1 = vld [vmem:[%s2983_s3 + $0x8] sm:$0xff] (!%p363_p9)  ;;  %v666_v2 = vld [vmem:[%s2983_s3 + $0x10] sm:$0xff] (!%p363_p9)  ;;  %v1863_v51 = vpack.c.bf16 (!%p363_p9), %v1107_v50, %v1106_v49  ;;  %s2566_s13 = scalar_lea.vmem (!%p363_p9), [#allocation2], %s2379_s26  ;;  %s1334_s14 = sand.u32 (!%p363_p9), 1, %s2208_s21  }
  0x1d   : > { %v1827_v3 = vpack.c.bf16 (!%p363_p9), %v665_v1, %v664_v0  ;;  %v667_v4 = vld [vmem:[%s2983_s3 + $0x18] sm:$0xff] (!%p363_p9)  ;;  %s1624_s15 = sshll.u32 (!%p363_p9), %s2208_s21, 11 }
  0x1e   : > { %v459_v5 = vld [vmem:[%s2984_s1] sm:$0xff]  ;;  %v460_v6 = vld [vmem:[%s2984_s1 + $0x8] sm:$0xff]  ;;  %v1831_v7 = vpack.c.bf16 %v667_v4, %v666_v2  ;;  %v461_v9 = vld [vmem:[%s2984_s1 + $0x10] sm:$0xff]  ;;  %s3008_s16 = smov (!%p423_p10, %s1556_s16), 31  ;;  %s2828_s21 = scalar_lea.hbm %s2970_s9, %s1624_s15 }
  0x1f   : > { %v1819_v8 = vpack.c.bf16 %v460_v6, %v459_v5  ;;  %v462_v10 = vld [vmem:[%s2984_s1 + $0x18] sm:$0xff]  ;;  %1828 = vmatprep.subr.bf16.mxu1 %v1827_v3  ;;  %s2262_s22 = sshll.u32 %s3008_s16, 3  ;;  %v2370_v52 = vld [vmem:[%s2986_s4] ss:$0 sm:$0xff]  ;;  %s2815_s16 = scalar_lea.hbm %s2971_s10, %s1624_s15 }
  0x20   : > { %v1823_v11 = vpack.c.bf16 %v462_v10, %v461_v9  ;;  %1830 = vmatpush3.bf16.msra.mxu1 %v1827_v3  ;;  %s2268_s25 = scalar_lea.vmem %s2985_s0, %s2262_s22  ;;  %v2375_v53 = vld [vmem:[%s2987_s2] ss:$0 sm:$0xff]  ;;  %s2512_s29 = scalar_lea.vmem %s2966_s5, %s2262_s22 }
  0x21   : > { %1820 = vmatprep.subr.bf16.mxu0 %v1819_v8  ;;  %1832 = vmatprep.subr.bf16.mxu1 %v1831_v7  ;;  %v443_v12 = vld [vmem:[%s2268_s25] sm:$0xff]  ;;  %v444_v13 = vld [vmem:[%s2268_s25 + $0x8] sm:$0xff]  ;;  %v445_v14 = vld [vmem:[%s2268_s25 + $0x10] sm:$0xff]  ;;  %s2821_s1 = scalar_lea.hbm %s2972_s11, %s1624_s15  ;;  %s2830_s4 = scalar_lea.sflag [#allocation5], %s1334_s14 }
  0x22   : > { %1822 = vmatpush3.bf16.msra.mxu0 %v1819_v8  ;;  %1739 = vmatprep.mubr.msk.f32.mxu1 %vm470_vm0, %v443_v12  ;;  %v446_v15 = vld [vmem:[%s2268_s25 + $0x18] sm:$0xff]  ;;  %v447_v16 = vld [vmem:[%s2268_s25 + $0x20] sm:$0xff]  ;;  %v448_v17 = vld [vmem:[%s2268_s25 + $0x28] sm:$0xff]  ;;  %s2122_s0 = smov [#allocation4]  }
  0x23   : > { %1824 = vmatprep.subr.bf16.mxu0 %v1823_v11  ;;  %1707 = vmatprep.mubr.msk.f32.mxu0 %vm470_vm0, %v443_v12  ;;  %v449_v18 = vld [vmem:[%s2268_s25 + $0x30] sm:$0xff]  ;;  %v450_v19 = vld [vmem:[%s2268_s25 + $0x38] sm:$0xff]  ;;  %v451_v20 = vld [vmem:[%s2268_s25 + $0x40] sm:$0xff]  ;;  %s2002_s30 = sshll.u32 %s2122_s0, 4  ;;  %s2003_s30 = int_to_ptr.vmem [resolvable:$false] %s2002_s30 }
  0x24   : > { %1834 = vmatpush3.bf16.msra.mxu1 %v1831_v7  ;;  %v452_v21 = vld [vmem:[%s2268_s25 + $0x48] sm:$0xff]  ;;  %v453_v22 = vld [vmem:[%s2268_s25 + $0x50] sm:$0xff]  ;;  %v454_v23 = vld [vmem:[%s2268_s25 + $0x58] sm:$0xff] }
  0x25   : > { %v455_v24 = vld [vmem:[%s2268_s25 + $0x60] sm:$0xff]  ;;  %v456_v25 = vld [vmem:[%s2268_s25 + $0x68] sm:$0xff]  ;;  %v457_v26 = vld [vmem:[%s2268_s25 + $0x70] sm:$0xff]  ;;  %1867 = vmatprep.subr.bf16.mxu1 %v1835_v30 }
  0x26   : > { %1826 = vmatpush3.bf16.msra.mxu0 %v1823_v11  ;;  %v458_v27 = vld [vmem:[%s2268_s25 + $0x78] sm:$0xff] }
  0x27   : > { %1740 = vmatmul.mubr.msk.f32.vlgmr.msra.gmra.mrb[0].mxu1 %vm470_vm0, %v444_v13  ;;  %1836 = vmatprep.subr.bf16.mxu0 %v1835_v30 }
  0x28   : > { %1742 = vmatprep.mubr.msk.f32.mxu1 %vm470_vm0, %v445_v14  ;;  %1875 = vmatpush3.bf16.msra.mxu1 %v1835_v30 }
  0x29   : > { %1708 = vmatmul.mubr.msk.f32.vlgmr.msra.gmra.mrb[0].mxu0 %vm470_vm0, %v444_v13  ;;  %1868 = vmatprep.subr.bf16.mxu1 %v1839_v33 }
  0x2a   : > { %1710 = vmatprep.mubr.msk.f32.mxu0 %vm470_vm0, %v445_v14  ;;  %1838 = vmatpush3.bf16.msra.mxu0 %v1835_v30 }
  0x2b   : > { %1743 = vmatmul.mubr.msk.f32.gmra.mrb[2].mxu1 %vm470_vm0, %v446_v15  ;;  %1840 = vmatprep.subr.bf16.mxu0 %v1839_v33 }
  0x2c   : > { %1745 = vmatprep.mubr.msk.f32.mxu1 %vm470_vm0, %v447_v16  ;;  %1876 = vmatpush3.bf16.msra.mxu1 %v1839_v33 }
  0x2d   : > { %1711 = vmatmul.mubr.msk.f32.gmra.mrb[2].mxu0 %vm470_vm0, %v446_v15  ;;  %1869 = vmatprep.subr.bf16.mxu1 %v1843_v36 }
  0x2e   : > { %1713 = vmatprep.mubr.msk.f32.mxu0 %vm470_vm0, %v447_v16  ;;  %1842 = vmatpush3.bf16.msra.mxu0 %v1839_v33 }
  0x2f   : > { %1746 = vmatmul.mubr.msk.f32.gmra.mrb[4].mxu1 %vm470_vm0, %v448_v17  ;;  %1844 = vmatprep.subr.bf16.mxu0 %v1843_v36 }
  0x30   : > { %1748 = vmatprep.mubr.msk.f32.mxu1 %vm470_vm0, %v449_v18  ;;  %1877 = vmatpush3.bf16.msra.mxu1 %v1843_v36 }
  0x31   : > { %1714 = vmatmul.mubr.msk.f32.gmra.mrb[4].mxu0 %vm470_vm0, %v448_v17  ;;  %1870 = vmatprep.subr.bf16.mxu1 %v1847_v39 }
  0x32   : > { %1716 = vmatprep.mubr.msk.f32.mxu0 %vm470_vm0, %v449_v18  ;;  %1846 = vmatpush3.bf16.msra.mxu0 %v1843_v36 }
  0x33   : > { %1749 = vmatmul.mubr.msk.f32.gmra.mrb[6].mxu1 %vm470_vm0, %v450_v19  ;;  %1848 = vmatprep.subr.bf16.mxu0 %v1847_v39 }
  0x34   : > { %1751 = vmatprep.mubr.msk.f32.mxu1 %vm470_vm0, %v451_v20  ;;  %1878 = vmatpush3.bf16.msra.mxu1 %v1847_v39 }
  0x35   : > { %1717 = vmatmul.mubr.msk.f32.gmra.mrb[6].mxu0 %vm470_vm0, %v450_v19  ;;  %1871 = vmatprep.subr.bf16.mxu1 %v1851_v42 }
  0x36   : > { %1719 = vmatprep.mubr.msk.f32.mxu0 %vm470_vm0, %v451_v20  ;;  %1850 = vmatpush3.bf16.msra.mxu0 %v1847_v39 }
  0x37   : > { %1752 = vmatmul.mubr.msk.f32.gmra.mrb[8].mxu1 %vm470_vm0, %v452_v21  ;;  %1852 = vmatprep.subr.bf16.mxu0 %v1851_v42 }
  0x38   : > { %1754 = vmatprep.mubr.msk.f32.mxu1 %vm470_vm0, %v453_v22  ;;  %1879 = vmatpush3.bf16.msra.mxu1 %v1851_v42 }
  0x39   : > { %1720 = vmatmul.mubr.msk.f32.gmra.mrb[8].mxu0 %vm470_vm0, %v452_v21  ;;  %1872 = vmatprep.subr.bf16.mxu1 %v1855_v45 }
  0x3a   : > { %1722 = vmatprep.mubr.msk.f32.mxu0 %vm470_vm0, %v453_v22  ;;  %1854 = vmatpush3.bf16.msra.mxu0 %v1851_v42 }
  0x3b   : > { %1755 = vmatmul.mubr.msk.f32.gmra.mrb[10].mxu1 %vm470_vm0, %v454_v23  ;;  %1856 = vmatprep.subr.bf16.mxu0 %v1855_v45 }
  0x3c   : > { %1757 = vmatprep.mubr.msk.f32.mxu1 %vm470_vm0, %v455_v24  ;;  %1880 = vmatpush3.bf16.msra.mxu1 %v1855_v45 }
  0x3d   : > { %1723 = vmatmul.mubr.msk.f32.gmra.mrb[10].mxu0 %vm470_vm0, %v454_v23  ;;  %1873 = vmatprep.subr.bf16.mxu1 %v1859_v48 }
  0x3e   : > { %1725 = vmatprep.mubr.msk.f32.mxu0 %vm470_vm0, %v455_v24  ;;  %1858 = vmatpush3.bf16.msra.mxu0 %v1855_v45 }
  0x3f   : > { %1758 = vmatmul.mubr.msk.f32.gmra.mrb[12].mxu1 %vm470_vm0, %v456_v25  ;;  %1860 = vmatprep.subr.bf16.mxu0 %v1859_v48 }
  0x40   : > { %1760 = vmatprep.mubr.msk.f32.mxu1 %vm470_vm0, %v457_v26  ;;  %1881 = vmatpush3.bf16.msra.mxu1 %v1859_v48 }
  0x41   : > { %1726 = vmatmul.mubr.msk.f32.gmra.mrb[12].mxu0 %vm470_vm0, %v456_v25  ;;  %1874 = vmatprep.subr.bf16.mxu1 %v1863_v51 }
  0x42   : > { %1728 = vmatprep.mubr.msk.f32.mxu0 %vm470_vm0, %v457_v26  ;;  %1862 = vmatpush3.bf16.msra.mxu0 %v1859_v48 }
  0x43   : > { %1761 = vmatmul.mubr.msk.f32.gmra.mrb[14].mxu1 %vm470_vm0, %v458_v27  ;;  %1864 = vmatprep.subr.bf16.mxu0 %v1863_v51 }
  0x44   : > { %1882 = vmatpush3.bf16.msra.mxu1 %v1863_v51 }
  0x45   : > { %1729 = vmatmul.mubr.msk.f32.gmra.mrb[14].mxu0 %vm470_vm0, %v458_v27 }
  0x46   : > { %1866 = vmatpush3.bf16.msra.mxu0 %v1863_v51 }
  0xfa   : > { %v1741_v54 = vpop.f32.mrb[0].mxu1 }
  0xfb   : > { %v747_v55 = vadd.f32 %v1741_v54, %v2370_v52  ;;  %v741_v56 = vpop.f32.mrb[1].mxu1 }
  0xfc   : > { %v1709_v57 = vpop.f32.mrb[0].mxu0  ;;  %v742_v58 = vadd.f32 %v2370_v52, %v741_v56 }
  0xfd   : > { %v2384_v59 = vadd.f32 %v1709_v57, %v2375_v53  ;;  %v585_v60 = vpop.f32.mrb[1].mxu0  ;;  %v2386_v61 = vadd.f32 -5.0, %v747_v55 }
  0xfe   : > { %v2389_v62 = vadd.f32 %v2375_v53, %v585_v60  ;;  %v2391_v63 = vadd.f32 -5.0, %v742_v58  ;;  %v1744_v0 = vpop.f32.mrb[2].mxu1 }
  0xff   : > { %1293 = vst [vmem:[%s2394_s24 + $0x8] sm:$0xff] %v2384_v59  ;;  %v854_v1 = vmul.f32 1.442695, %v2386_v61  ;;  %v757_v2 = vadd.f32 %v1744_v0, %v2370_v52  ;;  %v751_v3 = vpop.f32.mrb[3].mxu1  ;;  %vm837_vm1 = vcmp.gt.f32.partialorder %v2386_v61, 20.0 }
 0x100   : > { %1292 = vst [vmem:[%s2394_s24] sm:$0xff] %v2389_v62  ;;  %v1712_v4 = vpop.f32.mrb[2].mxu0  ;;  %v852_v5 = vmul.f32 1.442695, %v2391_v63  ;;  %v752_v6 = vadd.f32 %v2370_v52, %v751_v3  ;;  %vm836_vm2 = vcmp.gt.f32.partialorder %v2391_v63, 20.0 }
 0x101   : > { %v2405_v7 = vadd.f32 %v1712_v4, %v2375_v53  ;;  %v595_v8 = vpop.f32.mrb[3].mxu0  ;;  %1934 = vpow2.f32 %v854_v1  ;;  %v2407_v9 = vadd.f32 -5.0, %v757_v2 }
 0x102   : > { %v2410_v10 = vadd.f32 %v2375_v53, %v595_v8  ;;  %1936 = vpow2.f32 %v852_v5  ;;  %v1747_v11 = vpop.f32.mrb[4].mxu1  ;;  %v2414_v12 = vadd.f32 -5.0, %v752_v6 }
 0x103   : > { %1295 = vst [vmem:[%s2394_s24 + $0x18] sm:$0xff] %v2405_v7  ;;  %v761_v13 = vpop.f32.mrb[5].mxu1  ;;  %v858_v15 = vmul.f32 1.442695, %v2407_v9  ;;  %v767_v16 = vadd.f32 %v1747_v11, %v2370_v52  ;;  %vm839_vm4 = vcmp.gt.f32.partialorder %v2407_v9, 20.0 }
 0x104   : > { %1294 = vst [vmem:[%s2394_s24 + $0x10] sm:$0xff] %v2410_v10  ;;  %v1715_v14 = vpop.f32.mrb[4].mxu0  ;;  %v762_v19 = vadd.f32 %v2370_v52, %v761_v13  ;;  %v856_v22 = vmul.f32 1.442695, %v2414_v12  ;;  %vm838_vm6 = vcmp.gt.f32.partialorder %v2414_v12, 20.0 }
 0x105   : > { %v2421_v17 = vadd.f32 %v1715_v14, %v2375_v53  ;;  %v605_v18 = vpop.f32.mrb[5].mxu0  ;;  %1938 = vpow2.f32 %v858_v15  ;;  %v2433_v26 = vadd.f32 -5.0, %v767_v16 }
 0x106   : > { %v2425_v20 = vadd.f32 %v2375_v53, %v605_v18  ;;  %v1750_v21 = vpop.f32.mrb[6].mxu1  ;;  %v2439_v30 = vadd.f32 -5.0, %v762_v19  ;;  %1940 = vpow2.f32 %v856_v22 }
 0x107   : > { %1297 = vst [vmem:[%s2394_s24 + $0x28] sm:$0xff] %v2421_v17  ;;  %v777_v23 = vadd.f32 %v1750_v21, %v2370_v52  ;;  %v771_v24 = vpop.f32.mrb[7].mxu1  ;;  %v862_v39 = vmul.f32 1.442695, %v2433_v26  ;;  %vm841_vm8 = vcmp.gt.f32.partialorder %v2433_v26, 20.0 }
 0x108   : > { %1296 = vst [vmem:[%s2394_s24 + $0x20] sm:$0xff] %v2425_v20  ;;  %v1718_v25 = vpop.f32.mrb[6].mxu0  ;;  %v772_v27 = vadd.f32 %v2370_v52, %v771_v24  ;;  %v860_v44 = vmul.f32 1.442695, %v2439_v30  ;;  %vm840_vm11 = vcmp.gt.f32.partialorder %v2439_v30, 20.0 }
 0x109   : > { %v2437_v28 = vadd.f32 %v1718_v25, %v2375_v53  ;;  %v615_v29 = vpop.f32.mrb[7].mxu0  ;;  %v2444_v32 = vadd.f32 -5.0, %v777_v23 }
 0x10a   : > { %v2442_v31 = vadd.f32 %v2375_v53, %v615_v29  ;;  %v1753_v33 = vpop.f32.mrb[8].mxu1  ;;  %v2458_v40 = vadd.f32 -5.0, %v772_v27 }
 0x10b   : > { %1299 = vst [vmem:[%s2394_s24 + $0x38] sm:$0xff] %v2437_v28  ;;  %v2448_v34 = vpop.eup %1934  ;;  %v787_v35 = vadd.f32 %v1753_v33, %v2370_v52  ;;  %v781_v36 = vpop.f32.mrb[9].mxu1  ;;  %v866_v45 = vmul.f32 1.442695, %v2444_v32  ;;  %vm843_vm12 = vcmp.gt.f32.partialorder %v2444_v32, 20.0 }
 0x10c   : > { %1298 = vst [vmem:[%s2394_s24 + $0x30] sm:$0xff] %v2442_v31  ;;  %v2453_v37 = vpop.f32.mrb[8].mxu0  ;;  %v2455_v38 = vpop.eup %1936  ;;  %v782_v41 = vadd.f32 %v2370_v52, %v781_v36  ;;  %v893_v42 = vadd.f32 1.0, %v2448_v34  ;;  %v864_v54 = vmul.f32 1.442695, %v2458_v40  ;;  %v896_v60 = vmul.f32 -0.5, %v2448_v34 }
 0x10d   : > { %v2462_v43 = vpop.f32.mrb[9].mxu0  ;;  %v2466_v46 = vadd.f32 -5.0, %v787_v35  ;;  %v884_v50 = vadd.f32 1.0, %v2455_v38  ;;  %v887_v6 = vmul.f32 -0.5, %v2455_v38  ;;  %v899_v29 = vand.u32 2147483647, %v2448_v34 }
 0x10e   : > { %v1756_v47 = vpop.f32.mrb[10].mxu1  ;;  %1942 = vlog2.f32 %v893_v42  ;;  %v2473_v55 = vadd.f32 -5.0, %v782_v41  ;;  %v897_v19 = vadd.f32 1.0, %v896_v60  ;;  %vm842_vm14 = vcmp.gt.f32.partialorder %v2458_v40, 20.0 }
 0x10f   : > { %v797_v48 = vadd.f32 %v1756_v47, %v2370_v52  ;;  %v791_v49 = vpop.f32.mrb[11].mxu1  ;;  %1944 = vpow2.f32 %v862_v39  ;;  %v2481_v0 = vpop.eup %1938  ;;  %v870_v1 = vmul.f32 1.442695, %v2466_v46  ;;  %v888_v33 = vadd.f32 1.0, %v887_v6 }
 0x110   : > { %v2470_v51 = vpop.f32.mrb[10].mxu0  ;;  %v792_v56 = vadd.f32 %v2370_v52, %v791_v49  ;;  %1946 = vpow2.f32 %v860_v44  ;;  %v868_v11 = vmul.f32 1.442695, %v2473_v55  ;;  %v2494_v15 = vpop.eup %1940  ;;  %v911_v21 = vadd.f32 1.0, %v2481_v0 }
 0x111   : > { %v2476_v57 = vpop.f32.mrb[11].mxu0  ;;  %v2478_v58 = vadd.f32 -5.0, %v797_v48  ;;  %1948 = vpow2.f32 %v866_v45  ;;  %v914_v41 = vmul.f32 -0.5, %v2481_v0  ;;  %v898_v47 = vmul.f32 %v2448_v34, %v897_v19 }
 0x112   : > { %v2484_v2 = vadd.f32 -5.0, %v792_v56  ;;  %v1759_v3 = vpop.f32.mrb[12].mxu1  ;;  %1950 = vlog2.f32 %v884_v50  ;;  %v902_v48 = vadd.f32 1.0, %v2494_v15  ;;  %vm900_vm3 = vcmp.lt.f32.partialorder %v899_v29, 0.0004427343 }
 0x113   : > { %v807_v4 = vadd.f32 %v1759_v3, %v2370_v52  ;;  %v801_v5 = vpop.f32.mrb[13].mxu1  ;;  %1952 = vpow2.f32 %v864_v54  ;;  %v874_v16 = vmul.f32 1.442695, %v2478_v58 }
 0x114   : > { %v2488_v8 = vpop.f32.mrb[12].mxu0  ;;  %v802_v13 = vadd.f32 %v2370_v52, %v801_v5  ;;  %1954 = vpow2.f32 %v870_v1  ;;  %v872_v22 = vmul.f32 1.442695, %v2484_v2  ;;  %v1045_v1 = vld [vmem:[%s2512_s29 + $0x8] sm:$0xff]  ;;  %v915_v5 = vadd.f32 1.0, %v914_v41 }
 0x115   : > { %v2492_v14 = vpop.f32.mrb[13].mxu0  ;;  %v2497_v18 = vadd.f32 -5.0, %v807_v4  ;;  %1956 = vlog2.f32 %v911_v21  ;;  %v889_v4 = vmul.f32 %v2455_v38, %v888_v33 }
 0x116   : > { %v2502_v23 = vadd.f32 -5.0, %v802_v13  ;;  %v1762_v24 = vpop.f32.mrb[14].mxu1  ;;  %1958 = vpow2.f32 %v868_v11 }
 0x117   : > { %v817_v25 = vadd.f32 %v1762_v24, %v2370_v52  ;;  %v811_v27 = vpop.f32.mrb[15].mxu1  ;;  %v878_v36 = vmul.f32 1.442695, %v2497_v18  ;;  %1960 = vpow2.f32 %v874_v16  ;;  %v905_v16 = vmul.f32 -0.5, %v2494_v15  ;;  %v1044_v24 = vld [vmem:[%s2512_s29] sm:$0xff] }
 0x118   : > { %v2506_v35 = vpop.f32.mrb[14].mxu0  ;;  %v812_v39 = vadd.f32 %v2370_v52, %v811_v27  ;;  %v1943_v44 = vpop.eup %1942  ;;  %1962 = vpow2.f32 %v872_v22  ;;  %v876_v50 = vmul.f32 1.442695, %v2502_v23  ;;  %v890_v52 = vand.u32 2147483647, %v2455_v38 }
 0x119   : > { %v2517_v42 = vpop.f32.mrb[15].mxu0  ;;  %v2519_v45 = vadd.f32 -5.0, %v817_v25  ;;  %v2523_v49 = vpop.eup %1944  ;;  %v895_v54 = vmul.f32 0.6931472, %v1943_v44  ;;  %1964 = vlog2.f32 %v902_v48  ;;  %v908_v27 = vand.u32 2147483647, %v2494_v15 }
 0x11a   : > { %v2527_v56 = vpop.eup %1946  ;;  %v2530_v60 = vadd.f32 -5.0, %v812_v39  ;;  %1966 = vpow2.f32 %v878_v36  ;;  %v929_v19 = vadd.f32 1.0, %v2523_v49  ;;  %vm891_vm5 = vcmp.lt.f32.partialorder %v890_v52, 0.0004427343 }
 0x11b   : > { %v2533_v34 = vpop.eup %1948  ;;  %v901_v3 = vsel %vm900_vm3, %v898_v47, %v895_v54  ;;  %v882_v11 = vmul.f32 1.442695, %v2519_v45  ;;  %1968 = vpow2.f32 %v876_v50  ;;  %v932_v39 = vmul.f32 -0.5, %v2523_v49 }
 0x11c   : > { %v1951_v6 = vpop.eup %1950  ;;  %v1029_v13 = vsel %vm837_vm1, %v2386_v61, %v901_v3  ;;  %v880_v25 = vmul.f32 1.442695, %v2530_v60  ;;  %v917_v61 = vand.u32 2147483647, %v2481_v0  ;;  %1970 = vlog2.f32 %v929_v19 }
 0x11d   : > { %v2543_v21 = vpop.eup %1952  ;;  %v1061_v22 = vmul.f32 %v1045_v1, %v1029_v13  ;;  %1309 = vst [vmem:[%s2546_s12 + $0x8] sm:$0xff] %v1029_v13  ;;  %v886_v38 = vmul.f32 0.6931472, %v1951_v6  ;;  %v920_v41 = vadd.f32 1.0, %v2527_v56  ;;  %1972 = vpow2.f32 %v882_v11 }
 0x11e   : > { %v2553_v29 = vpop.eup %1954  ;;  %v916_v48 = vmul.f32 %v2481_v0, %v915_v5  ;;  %v906_v50 = vadd.f32 1.0, %v905_v16  ;;  %v935_v1 = vand.u32 2147483647, %v2523_v49  ;;  %vm918_vm7 = vcmp.lt.f32.partialorder %v917_v61, 0.0004427343 }
 0x11f   : > { %v1077_v33 = vadd.f32 %v1061_v22, %v2384_v59  ;;  %v892_v36 = vsel %vm891_vm5, %v889_v4, %v886_v38  ;;  %v1957_v44 = vpop.eup %1956  ;;  %1974 = vlog2.f32 %v920_v41  ;;  %v923_v0 = vmul.f32 -0.5, %v2527_v56 }
 0x120   : > { %v1028_v47 = vsel %vm836_vm2, %v2391_v63, %v892_v36  ;;  %v2563_v54 = vpop.eup %1958  ;;  %v913_v52 = vmul.f32 0.6931472, %v1957_v44  ;;  %1976 = vpow2.f32 %v880_v25  ;;  %v1047_v63 = vld [vmem:[%s2512_s29 + $0x18] sm:$0xff]  ;;  %v947_v4 = vadd.f32 1.0, %v2533_v34  ;;  %v1048_v36 = vld [vmem:[%s2512_s29 + $0x20] sm:$0xff] }
 0x121   : > { %1277 = vst [vmem:[%s2566_s13 + $0x8] sm:$0xff] %v1077_v33  ;;  %v1060_v59 = vmul.f32 %v1044_v24, %v1028_v47  ;;  %1308 = vst [vmem:[%s2546_s12] sm:$0xff] %v1028_v47  ;;  %v2571_v3 = vpop.eup %1960  ;;  %vm2580_vm9 = vcmp.lt.f32.partialorder %v908_v27, 0.0004427343  ;;  %v933_v16 = vadd.f32 1.0, %v932_v39  ;;  %v950_v38 = vmul.f32 -0.5, %v2533_v34 }
 0x122   : > { %v2576_v5 = vpop.eup %1962  ;;  %v919_v11 = vsel %vm918_vm7, %v916_v48, %v913_v52  ;;  %1978 = vlog2.f32 %v947_v4  ;;  %v938_v24 = vadd.f32 1.0, %v2543_v21  ;;  %v907_v27 = vmul.f32 %v2494_v15, %v906_v50 }
 0x123   : > { %v1076_v6 = vadd.f32 %v1060_v59, %v2389_v62  ;;  %v1965_v19 = vpop.eup %1964  ;;  %v1031_v22 = vsel %vm839_vm4, %v2407_v9, %v919_v11  ;;  %vm2594_vm10 = vcmp.lt.f32.partialorder %v935_v1, 0.0004427343  ;;  %v1046_v9 = vld [vmem:[%s2512_s29 + $0x10] sm:$0xff]  ;;  %v924_v39 = vadd.f32 1.0, %v923_v0  ;;  %v1049_v11 = vld [vmem:[%s2512_s29 + $0x28] sm:$0xff] }
 0x124   : > { %v2589_v25 = vpop.eup %1966  ;;  %v1063_v62 = vmul.f32 %v1047_v63, %v1031_v22  ;;  %1311 = vst [vmem:[%s2546_s12 + $0x18] sm:$0xff] %v1031_v22  ;;  %v904_v61 = vmul.f32 0.6931472, %v1965_v19  ;;  %v926_v41 = vand.u32 2147483647, %v2527_v56  ;;  %1980 = vlog2.f32 %v938_v24 }
 0x125   : > { %1276 = vst [vmem:[%s2566_s13] sm:$0xff] %v1076_v6  ;;  %1795 = vmatprep.mubr.f32.mxu0 %v1076_v6  ;;  %v2603_v44 = vadd.f32 %v2453_v37, %v2375_v53  ;;  %v2605_v15 = vpop.eup %1968  ;;  %v953_v50 = vand.u32 2147483647, %v2533_v34  ;;  %v934_v37 = vmul.f32 %v2523_v49, %v933_v16  ;;  %v951_v1 = vadd.f32 1.0, %v950_v38  ;;  %v1050_v49 = vld [vmem:[%s2512_s29 + $0x30] sm:$0xff] }
 0x126   : > { %1796 = vmatmul.mubr.f32.vlgmr.msra.gmra.mrb[16].mxu0 %v1077_v33  ;;  %v1079_v47 = vadd.f32 %v1063_v62, %v2405_v7  ;;  %v910_v48 = vsel %vm2580_vm9, %v907_v27, %v904_v61  ;;  %v965_v33 = vadd.f32 1.0, %v2553_v29  ;;  %v1971_v59 = vpop.eup %1970  ;;  %v941_v63 = vmul.f32 -0.5, %v2543_v21 }
 0x127   : > { %v1030_v52 = vsel %vm838_vm6, %v2414_v12, %v910_v48  ;;  %1301 = vst [vmem:[%s2394_s24 + $0x48] sm:$0xff] %v2603_v44  ;;  %v931_v0 = vmul.f32 0.6931472, %v1971_v59  ;;  %v944_v4 = vand.u32 2147483647, %v2543_v21  ;;  %v2623_v6 = vpop.eup %1972  ;;  %v925_v12 = vmul.f32 %v2527_v56, %v924_v39 }
 0x128   : > { %1279 = vst [vmem:[%s2566_s13 + $0x18] sm:$0xff] %v1079_v47  ;;  %v1062_v7 = vmul.f32 %v1046_v9, %v1030_v52  ;;  %1310 = vst [vmem:[%s2546_s12 + $0x10] sm:$0xff] %v1030_v52  ;;  %1982 = vlog2.f32 %v965_v33  ;;  %vm2627_vm13 = vcmp.lt.f32.partialorder %v926_v41, 0.0004427343  ;;  %v2633_v13 = vadd.f32 %v2375_v53, %v2462_v43 }
 0x129   : > { %v956_v16 = vadd.f32 1.0, %v2563_v54  ;;  %v1975_v19 = vpop.eup %1974  ;;  %v937_v56 = vsel %vm2594_vm10, %v934_v37, %v931_v0  ;;  %vm2640_vm15 = vcmp.lt.f32.partialorder %v953_v50, 0.0004427343  ;;  %v968_v24 = vmul.f32 -0.5, %v2553_v29 }
 0x12a   : > { %v1078_v22 = vadd.f32 %v1062_v7, %v2410_v10  ;;  %v2645_v43 = vpop.eup %1976  ;;  %v1033_v62 = vsel %vm841_vm8, %v2433_v26, %v937_v56  ;;  %v922_v61 = vmul.f32 0.6931472, %v1975_v19  ;;  %v942_v27 = vadd.f32 1.0, %v941_v63  ;;  %1300 = vst [vmem:[%s2394_s24 + $0x40] sm:$0xff] %v2633_v13  ;;  %v1051_v63 = vld [vmem:[%s2512_s29 + $0x38] sm:$0xff] }
 0x12b   : > { %1984 = vlog2.f32 %v956_v16  ;;  %v1065_v10 = vmul.f32 %v1049_v11, %v1033_v62  ;;  %1313 = vst [vmem:[%s2546_s12 + $0x28] sm:$0xff] %v1033_v62  ;;  %v952_v9 = vmul.f32 %v2533_v34, %v951_v1  ;;  %vm2656_vm0 = vcmp.lt.f32.partialorder %v944_v4, 0.0004427343 }
 0x12c   : > { %1278 = vst [vmem:[%s2566_s13 + $0x10] sm:$0xff] %v1078_v22  ;;  %1798 = vmatprep.mubr.f32.mxu0 %v1078_v22  ;;  %v2662_v26 = vadd.f32 %v2470_v51, %v2375_v53  ;;  %v1979_v41 = vpop.eup %1978  ;;  %vm845_vm1 = vcmp.gt.f32.partialorder %v2466_v46, 20.0  ;;  %v928_v48 = vsel %vm2627_vm13, %v925_v12, %v922_v61  ;;  %v971_v34 = vand.u32 2147483647, %v2553_v29 }
 0x12d   : > { %1799 = vmatmul.mubr.f32.gmra.mrb[18].mxu0 %v1079_v47  ;;  %v959_v50 = vmul.f32 -0.5, %v2563_v54  ;;  %v983_v33 = vadd.f32 1.0, %v2571_v3  ;;  %v1081_v59 = vadd.f32 %v1065_v10, %v2421_v17  ;;  %v1032_v51 = vsel %vm840_vm11, %v2439_v30, %v928_v48 }
 0x12e   : > { %v949_v52 = vmul.f32 0.6931472, %v1979_v41  ;;  %v969_v37 = vadd.f32 1.0, %v968_v24  ;;  %1303 = vst [vmem:[%s2394_s24 + $0x58] sm:$0xff] %v2662_v26  ;;  %v1981_v1 = vpop.eup %1980  ;;  %v1064_v47 = vmul.f32 %v1048_v36, %v1032_v51  ;;  %1312 = vst [vmem:[%s2546_s12 + $0x20] sm:$0xff] %v1032_v51  ;;  %v943_v7 = vmul.f32 %v2543_v21, %v942_v27  ;;  %v1053_v27 = vld [vmem:[%s2512_s29 + $0x48] sm:$0xff] }
 0x12f   : > { %v962_v0 = vand.u32 2147483647, %v2563_v54  ;;  %1986 = vlog2.f32 %v983_v33  ;;  %1281 = vst [vmem:[%s2566_s13 + $0x28] sm:$0xff] %v1081_v59  ;;  %v940_v30 = vmul.f32 0.6931472, %v1981_v1  ;;  %v2685_v4 = vadd.f32 %v2375_v53, %v2476_v57 }
 0x130   : > { %v955_v17 = vsel %vm2640_vm15, %v952_v9, %v949_v52  ;;  %v974_v11 = vadd.f32 1.0, %v2576_v5  ;;  %v1080_v12 = vadd.f32 %v1064_v47, %v2425_v20  ;;  %v960_v16 = vadd.f32 1.0, %v959_v50 }
 0x131   : > { %v1035_v21 = vsel %vm843_vm12, %v2444_v32, %v955_v17  ;;  %v986_v19 = vmul.f32 -0.5, %v2571_v3  ;;  %v946_v57 = vsel %vm2656_vm0, %v943_v7, %v940_v30  ;;  %v970_v38 = vmul.f32 %v2553_v29, %v969_v37  ;;  %1302 = vst [vmem:[%s2394_s24 + $0x50] sm:$0xff] %v2685_v4 }
 0x132   : > { %v1983_v22 = vpop.eup %1982  ;;  %v1067_v56 = vmul.f32 %v1051_v63, %v1035_v21  ;;  %1315 = vst [vmem:[%s2546_s12 + $0x38] sm:$0xff] %v1035_v21  ;;  %1988 = vlog2.f32 %v974_v11  ;;  %1280 = vst [vmem:[%s2566_s13 + $0x20] sm:$0xff] %v1080_v12  ;;  %v1034_v20 = vsel %vm842_vm14, %v2458_v40, %v946_v57  ;;  %1801 = vmatprep.mubr.f32.mxu0 %v1080_v12  ;;  %v977_v24 = vmul.f32 -0.5, %v2576_v5 }
 0x133   : > { %v967_v32 = vmul.f32 0.6931472, %v1983_v22  ;;  %v2707_v62 = vadd.f32 %v2488_v8, %v2375_v53  ;;  %v1066_v61 = vmul.f32 %v1050_v49, %v1034_v20  ;;  %1314 = vst [vmem:[%s2546_s12 + $0x30] sm:$0xff] %v1034_v20  ;;  %vm972_vm2 = vcmp.lt.f32.partialorder %v971_v34, 0.0004427343  ;;  %1802 = vmatmul.mubr.f32.gmra.mrb[20].mxu0 %v1081_v59 }
 0x134   : > { %v1083_v29 = vadd.f32 %v1067_v56, %v2437_v28  ;;  %v1001_v40 = vadd.f32 1.0, %v2589_v25  ;;  %v961_v9 = vmul.f32 %v2563_v54, %v960_v16  ;;  %vm2714_vm3 = vcmp.lt.f32.partialorder %v962_v0, 0.0004427343  ;;  %v1052_v54 = vld [vmem:[%s2512_s29 + $0x40] sm:$0xff] }
 0x135   : > { %v1985_v10 = vpop.eup %1984  ;;  %v973_v36 = vsel %vm972_vm2, %v970_v38, %v967_v32  ;;  %v987_v8 = vadd.f32 1.0, %v986_v19  ;;  %1305 = vst [vmem:[%s2394_s24 + $0x68] sm:$0xff] %v2707_v62  ;;  %v1082_v28 = vadd.f32 %v1066_v61, %v2442_v31  ;;  %v989_v50 = vand.u32 2147483647, %v2571_v3  ;;  %v1054_v19 = vld [vmem:[%s2512_s29 + $0x50] sm:$0xff] }
 0x136   : > { %1283 = vst [vmem:[%s2566_s13 + $0x38] sm:$0xff] %v1083_v29  ;;  %v1037_v41 = vsel %vm845_vm1, %v2466_v46, %v973_v36  ;;  %v958_v48 = vmul.f32 0.6931472, %v1985_v10  ;;  %1990 = vlog2.f32 %v1001_v40  ;;  %v978_v33 = vadd.f32 1.0, %v977_v24 }
 0x137   : > { %v1069_v34 = vmul.f32 %v1053_v27, %v1037_v41  ;;  %1317 = vst [vmem:[%s2546_s12 + $0x48] sm:$0xff] %v1037_v41  ;;  %v2730_v59 = vadd.f32 %v2375_v53, %v2492_v14  ;;  %vm844_vm4 = vcmp.gt.f32.partialorder %v2473_v55, 20.0  ;;  %1282 = vst [vmem:[%s2566_s13 + $0x30] sm:$0xff] %v1082_v28  ;;  %1804 = vmatprep.mubr.f32.mxu0 %v1082_v28  ;;  %v1004_v46 = vmul.f32 -0.5, %v2589_v25 }
 0x138   : > { %v964_v31 = vsel %vm2714_vm3, %v961_v9, %v958_v48  ;;  %v992_v51 = vadd.f32 1.0, %v2605_v15  ;;  %v988_v14 = vmul.f32 %v2571_v3, %v987_v8  ;;  %1805 = vmatmul.mubr.f32.gmra.mrb[22].mxu0 %v1083_v29  ;;  %v2745_v47 = vadd.f32 %v2506_v35, %v2375_v53  ;;  %v1057_v29 = vld [vmem:[%s2512_s29 + $0x68] sm:$0xff] }
 0x139   : > { %v1987_v52 = vpop.eup %1986  ;;  %v1085_v37 = vadd.f32 %v1069_v34, %v2603_v44  ;;  %v1036_v1 = vsel %vm844_vm4, %v2473_v55, %v964_v31  ;;  %1304 = vst [vmem:[%s2394_s24 + $0x60] sm:$0xff] %v2730_v59  ;;  %v980_v0 = vand.u32 2147483647, %v2576_v5  ;;  %vm847_vm5 = vcmp.gt.f32.partialorder %v2478_v58, 20.0  ;;  %v1055_v55 = vld [vmem:[%s2512_s29 + $0x58] sm:$0xff] }
 0x13a   : > { %v1068_v63 = vmul.f32 %v1052_v54, %v1036_v1  ;;  %1316 = vst [vmem:[%s2546_s12 + $0x40] sm:$0xff] %v1036_v1  ;;  %v985_v7 = vmul.f32 0.6931472, %v1987_v52  ;;  %1992 = vlog2.f32 %v992_v51  ;;  %vm990_vm6 = vcmp.lt.f32.partialorder %v989_v50, 0.0004427343  ;;  %1307 = vst [vmem:[%s2394_s24 + $0x78] sm:$0xff] %v2745_v47 }
 0x13b   : > { %1285 = vst [vmem:[%s2566_s13 + $0x48] sm:$0xff] %v1085_v37  ;;  %v979_v3 = vmul.f32 %v2576_v5, %v978_v33  ;;  %v1019_v44 = vadd.f32 1.0, %v2623_v6  ;;  %v1005_v11 = vadd.f32 1.0, %v1004_v46  ;;  %v2759_v12 = vadd.f32 %v2375_v53, %v2517_v42  ;;  %v1059_v31 = vld [vmem:[%s2512_s29 + $0x78] sm:$0xff]  ;;  %v1058_v1 = vld [vmem:[%s2512_s29 + $0x70] sm:$0xff] }
 0x13c   : > { %v1989_v35 = vpop.eup %1988  ;;  %v1084_v17 = vadd.f32 %v1068_v63, %v2633_v13  ;;  %v991_v30 = vsel %vm990_vm6, %v988_v14, %v985_v7  ;;  %v995_v5 = vmul.f32 -0.5, %v2605_v15  ;;  %vm981_vm7 = vcmp.lt.f32.partialorder %v980_v0, 0.0004427343 }
 0x13d   : > { %v1039_v21 = vsel %vm847_vm5, %v2478_v58, %v991_v30  ;;  %v976_v49 = vmul.f32 0.6931472, %v1989_v35  ;;  %1994 = vlog2.f32 %v1019_v44  ;;  %v1007_v13 = vand.u32 2147483647, %v2589_v25  ;;  %1306 = vst [vmem:[%s2394_s24 + $0x70] sm:$0xff] %v2759_v12 }
 0x13e   : > { %1284 = vst [vmem:[%s2566_s13 + $0x40] sm:$0xff] %v1084_v17  ;;  %v1071_v16 = vmul.f32 %v1055_v55, %v1039_v21  ;;  %1319 = vst [vmem:[%s2546_s12 + $0x58] sm:$0xff] %v1039_v21  ;;  %1807 = vmatprep.mubr.f32.mxu1 %v1084_v17  ;;  %v1010_v22 = vadd.f32 1.0, %v2645_v43  ;;  %vm846_vm8 = vcmp.gt.f32.partialorder %v2484_v2, 20.0  ;;  %v1022_v57 = vmul.f32 -0.5, %v2623_v6 }
 0x13f   : > { %v982_v53 = vsel %vm981_vm7, %v979_v3, %v976_v49  ;;  %1808 = vmatmul.mubr.f32.vlgmr.msra.gmra.mrb[16].mxu1 %v1085_v37  ;;  %v1006_v32 = vmul.f32 %v2589_v25, %v1005_v11  ;;  %v996_v24 = vadd.f32 1.0, %v995_v5  ;;  %vm1008_vm9 = vcmp.lt.f32.partialorder %v1007_v13, 0.0004427343 }
 0x140   : > { %v1991_v58 = vpop.eup %1990  ;;  %v1087_v42 = vadd.f32 %v1071_v16, %v2662_v26  ;;  %v1038_v56 = vsel %vm846_vm8, %v2484_v2, %v982_v53  ;;  %1996 = vlog2.f32 %v1010_v22  ;;  %v998_v61 = vand.u32 2147483647, %v2605_v15 }
 0x141   : > { %v1070_v38 = vmul.f32 %v1054_v19, %v1038_v56  ;;  %1318 = vst [vmem:[%s2546_s12 + $0x50] sm:$0xff] %v1038_v56  ;;  %v1003_v20 = vmul.f32 0.6931472, %v1991_v58  ;;  %vm849_vm10 = vcmp.gt.f32.partialorder %v2497_v18, 20.0  ;;  %v1013_v27 = vmul.f32 -0.5, %v2645_v43 }
 0x142   : > { %1287 = vst [vmem:[%s2566_s13 + $0x58] sm:$0xff] %v1087_v42  ;;  %v1023_v36 = vadd.f32 1.0, %v1022_v57  ;;  %v997_v39 = vmul.f32 %v2605_v15, %v996_v24  ;;  %v1025_v8 = vand.u32 2147483647, %v2623_v6  ;;  %vm999_vm11 = vcmp.lt.f32.partialorder %v998_v61, 0.0004427343 }
 0x143   : > { %v1086_v2 = vadd.f32 %v1070_v38, %v2685_v4  ;;  %v1009_v26 = vsel %vm1008_vm9, %v1006_v32, %v1003_v20  ;;  %v1056_v4 = vld [vmem:[%s2512_s29 + $0x60] sm:$0xff]  ;;  %vm848_vm12 = vcmp.gt.f32.partialorder %v2502_v23, 20.0  ;;  %v1014_v48 = vadd.f32 1.0, %v1013_v27  ;;  %s1373_s29 = sshll.u32 %s2394_s24, 4  ;;  %s2004_s24 = scalar_lea.vmem %s2003_s30, 4096  ;;  %s2823_s29 = int_to_ptr.vmem [resolvable:$true] %s1373_s29 }
 0x144   : > { %v1993_v40 = vpop.eup %1992  ;;  %v1041_v10 = vsel %vm849_vm10, %v2497_v18, %v1009_v26  ;;  %v1024_v15 = vmul.f32 %v2623_v6, %v1023_v36  ;;  %v1016_v50 = vand.u32 2147483647, %v2645_v43  ;;  %vm1026_vm13 = vcmp.lt.f32.partialorder %v1025_v8, 0.0004427343  ;;  %s1998_s26 = scalar_lea.vmem %s2823_s29, 2048  ;;  %p2005_p0 = scmp.lt.s32.totalorder %s2823_s29, %s2003_s30 }
 0x145   : > { %1286 = vst [vmem:[%s2566_s13 + $0x50] sm:$0xff] %v1086_v2  ;;  %v1073_v25 = vmul.f32 %v1057_v29, %v1041_v10  ;;  %1321 = vst [vmem:[%s2546_s12 + $0x68] sm:$0xff] %v1041_v10  ;;  %v994_v9 = vmul.f32 0.6931472, %v1993_v40  ;;  %1810 = vmatprep.mubr.f32.mxu1 %v1086_v2  ;;  %vm851_vm14 = vcmp.gt.f32.partialorder %v2519_v45, 20.0  ;;  %v1015_v52 = vmul.f32 %v2645_v43, %v1014_v48  ;;  %p1999_p11 = scmp.ne.s32.totalorder %s2823_s29, %s1998_s26  ;;  %p2006_p1 = scmp.lt.s32.totalorder %s2004_s24, %s1998_s26 }
 0x146   : > { %1811 = vmatmul.mubr.f32.gmra.mrb[18].mxu1 %v1087_v42  ;;  %vm1017_vm15 = vcmp.lt.f32.partialorder %v1016_v50, 0.0004427343  ;;  %vm850_vm0 = vcmp.gt.f32.partialorder %v2530_v60, 20.0 }
 0x147   : > { %v1995_v28 = vpop.eup %1994  ;;  %v1089_v18 = vadd.f32 %v1073_v25, %v2707_v62  ;;  %v1000_v41 = vsel %vm999_vm11, %v997_v39, %v994_v9  ;;  %p2000_p12 = pnand %p1999_p11, %p2227_p5  ;;  %p2007_p2 = por %p2006_p1, %p2005_p0 }
 0x148   : > { %v1040_v34 = vsel %vm848_vm12, %v2502_v23, %v1000_v41  ;;  %v1021_v54 = vmul.f32 0.6931472, %v1995_v28 }
 0x149   : > { %1289 = vst [vmem:[%s2566_s13 + $0x68] sm:$0xff] %v1089_v18  ;;  %v1072_v33 = vmul.f32 %v1056_v4, %v1040_v34  ;;  %1320 = vst [vmem:[%s2546_s12 + $0x60] sm:$0xff] %v1040_v34  ;;  %p2001_p13 = pneg %p2000_p12 }
 0x14a   : > { %v1997_v46 = vpop.eup %1996  ;;  %v1027_v62 = vsel %vm1026_vm13, %v1024_v15, %v1021_v54 }
 0x14b   : > { %v1088_v51 = vadd.f32 %v1072_v33, %v2730_v59  ;;  %v1043_v23 = vsel %vm851_vm14, %v2519_v45, %v1027_v62  ;;  %v1012_v6 = vmul.f32 0.6931472, %v1997_v46  ;;  %p2008_p3 = pnand %p2007_p2, %p2001_p13 }
 0x14c   : > { %v1075_v37 = vmul.f32 %v1059_v31, %v1043_v23  ;;  %1323 = vst [vmem:[%s2546_s12 + $0x78] sm:$0xff] %v1043_v23 }
 0x14d   : > { %1288 = vst [vmem:[%s2566_s13 + $0x60] sm:$0xff] %v1088_v51  ;;  %v1018_v14 = vsel %vm1017_vm15, %v1015_v52, %v1012_v6  ;;  %1813 = vmatprep.mubr.f32.mxu1 %v1088_v51 }
 0x14e   : > { %v1091_v59 = vadd.f32 %v1075_v37, %v2745_v47  ;;  %v1042_v45 = vsel %vm850_vm0, %v2530_v60, %v1018_v14  ;;  %1814 = vmatmul.mubr.f32.gmra.mrb[20].mxu1 %v1089_v18 }
 0x14f   : > { %v1074_v63 = vmul.f32 %v1058_v1, %v1042_v45  ;;  %1322 = vst [vmem:[%s2546_s12 + $0x70] sm:$0xff] %v1042_v45 }
 0x150   : > { %1291 = vst [vmem:[%s2566_s13 + $0x78] sm:$0xff] %v1091_v59 }
 0x151   : > { %v1090_v43 = vadd.f32 %v1074_v63, %v2759_v12 }
 0x153   : > { %1290 = vst [vmem:[%s2566_s13 + $0x70] sm:$0xff] %v1090_v43  ;;  %1816 = vmatprep.mubr.f32.mxu1 %v1090_v43 }
 0x154   : > { %1817 = vmatmul.mubr.f32.gmra.mrb[22].mxu1 %v1091_v59 }
 0x155   : > { %2011 = shalt.err (!%p2008_p3)
}
 0x156   : > { %s2012_s2 = scalar_lea.hbm %s2815_s16, 2048  ;;  %s2016_s15 = scalar_lea.hbm %s2971_s10, 4096 }
 0x157   : > { %p2013_p4 = scmp.ne.s32.totalorder %s2815_s16, %s2012_s2  ;;  %p2017_p9 = scmp.lt.u32.totalorder %s2815_s16, %s2971_s10 }
 0x158   : > { %p2018_p10 = scmp.lt.u32.totalorder %s2016_s15, %s2012_s2  ;;  %p2020_p12 = scmp.lt.u32.totalorder %s2012_s2, %s2815_s16 }
 0x159   : > { %p2014_p7 = pnand %p2013_p4, %p2227_p5 }
 0x15a   : > { %p2019_p11 = por %p2018_p10, %p2017_p9 }
 0x15b   : > { %p2015_p8 = pneg %p2014_p7 }
 0x15c   : > { %p2021_p13 = por %p2020_p12, %p2019_p11 }
 0x15e   : > { %p2022_p0 = pnand %p2021_p13, %p2015_p8 }
 0x160   : > { %2025 = shalt.err (!%p2022_p0)
}
 0x161   : > { %s2123_s26 = smov 128   ;;  %s2124_s30 = smov 8  }
 0x162   : > { %1884 = dma.vmem_to_hbm [thread:$0]  (%p2227_p5), %s2823_s29, 2048, %s2815_s16, %s2830_s4, %s2123_s26, %s2123_s26, %s2124_s30  }
 0x163   : > { %s1357_s24 = sshll.u32 %s2566_s13, 4  ;;  %s1389_s2 = sshll.u32 %s2546_s12, 4  ;;  %s2859_s24 = int_to_ptr.vmem [resolvable:$true] %s1357_s24  ;;  %s2861_s2 = int_to_ptr.vmem [resolvable:$true] %s1389_s2 }
 0x164   : > { %s3000_s3 = sand.u32 1, %s2112_s18   ;;  %s2026_s15 = scalar_lea.vmem %s2859_s24, 2048 }
 0x165   : > { %s2865_s14 = scalar_lea.sflag [#allocation3], %s3000_s3  ;;  %p2027_p1 = scmp.ne.s32.totalorder %s2859_s24, %s2026_s15 }
 0x166   : > { %s2125_s25 = smov [#allocation2]  }
 0x167   : > { %p2028_p2 = pnand %p2027_p1, %p2227_p5  ;;  %s2030_s0 = sshll.u32 %s2125_s25, 4  ;;  %s2031_s0 = int_to_ptr.vmem [resolvable:$false] %s2030_s0 }
 0x168   : > { %s2032_s13 = scalar_lea.vmem %s2031_s0, 4096  ;;  %p2033_p4 = scmp.lt.s32.totalorder %s2859_s24, %s2031_s0 }
 0x169   : > { %p2029_p3 = pneg %p2028_p2  ;;  %p2034_p7 = scmp.lt.s32.totalorder %s2032_s13, %s2026_s15 }
 0x16b   : > { %p2035_p8 = por %p2034_p7, %p2033_p4 }
 0x16d   : > { %p2036_p9 = pnand %p2035_p8, %p2029_p3 }
 0x16f   : > { %2039 = shalt.err (!%p2036_p9)
}
 0x170   : > { %s2040_s12 = scalar_lea.hbm %s2828_s21, 2048  ;;  %s2044_s3 = scalar_lea.hbm %s2970_s9, 4096 }
 0x171   : > { %p2041_p10 = scmp.ne.s32.totalorder %s2828_s21, %s2040_s12  ;;  %p2045_p13 = scmp.lt.u32.totalorder %s2828_s21, %s2970_s9 }
 0x172   : > { %p2046_p0 = scmp.lt.u32.totalorder %s2044_s3, %s2040_s12  ;;  %p2048_p2 = scmp.lt.u32.totalorder %s2040_s12, %s2828_s21 }
 0x173   : > { %p2042_p11 = pnand %p2041_p10, %p2227_p5 }
 0x174   : > { %p2047_p1 = por %p2046_p0, %p2045_p13 }
 0x175   : > { %p2043_p12 = pneg %p2042_p11 }
 0x176   : > { %p2049_p3 = por %p2048_p2, %p2047_p1 }
 0x178   : > { %p2050_p4 = pnand %p2049_p3, %p2043_p12 }
 0x17a   : > { %2053 = shalt.err (!%p2050_p4)
}
 0x17b   : > { %1883 = dma.vmem_to_hbm [thread:$0]  (%p2227_p5), %s2859_s24, 2048, %s2828_s21, %s2865_s14, %s2123_s26, %s2123_s26, %s2124_s30  }
 0x17c   : > { %s2054_s15 = scalar_lea.vmem %s2861_s2, 2048  ;;  %s2126_s13 = smov [#allocation6]  }
 0x17d   : > { %p2055_p7 = scmp.ne.s32.totalorder %s2861_s2, %s2054_s15  ;;  %s2058_s12 = sshll.u32 %s2126_s13, 4  ;;  %s2059_s12 = int_to_ptr.vmem [resolvable:$false] %s2058_s12 }
 0x17e   : > { %s2060_s16 = scalar_lea.vmem %s2059_s12, 4096  ;;  %p2061_p10 = scmp.lt.s32.totalorder %s2861_s2, %s2059_s12 }
 0x17f   : > { %p2056_p8 = pnand %p2055_p7, %p2227_p5  ;;  %p2062_p11 = scmp.lt.s32.totalorder %s2060_s16, %s2054_s15 }
 0x181   : > { %p2057_p9 = pneg %p2056_p8  ;;  %p2063_p12 = por %p2062_p11, %p2061_p10 }
 0x183   : > { %p2064_p13 = pnand %p2063_p12, %p2057_p9 }
 0x185   : > { %2067 = shalt.err (!%p2064_p13)
}
 0x186   : > { %s2068_s21 = scalar_lea.hbm %s2821_s1, 2048  ;;  %s2072_s29 = scalar_lea.hbm %s2972_s11, 4096 }
 0x187   : > { %p2069_p0 = scmp.ne.s32.totalorder %s2821_s1, %s2068_s21  ;;  %p2073_p3 = scmp.lt.u32.totalorder %s2821_s1, %s2972_s11 }
 0x188   : > { %p2074_p4 = scmp.lt.u32.totalorder %s2072_s29, %s2068_s21  ;;  %p2076_p8 = scmp.lt.u32.totalorder %s2068_s21, %s2821_s1 }
 0x189   : > { %p2070_p1 = pnand %p2069_p0, %p2227_p5 }
 0x18a   : > { %p2075_p7 = por %p2074_p4, %p2073_p3 }
 0x18b   : > { %p2071_p2 = pneg %p2070_p1 }
 0x18c   : > { %p2077_p9 = por %p2076_p8, %p2075_p7 }
 0x18e   : > { %p2078_p10 = pnand %p2077_p9, %p2071_p2 }
 0x190   : > { %2081 = shalt.err (!%p2078_p10)
}
 0x191   : > { %1885 = dma.vmem_to_hbm [thread:$0]  (%p2227_p5), %s2861_s2, 2048, %s2821_s1, %s2830_s4, %s2123_s26, %s2123_s26, %s2124_s30  }
 0x192   : > { %v1612_v60 = vld [vmem:[%s2968_s7] ss:$0 sm:$0xff]  ;;  %s2924_s16 = scalar_lea.vmem %s2969_s8, %s2262_s22 }
 0x1f9   : > { %v1797_v47 = vpop.f32.mrb[16].mxu0 }
 0x1fa   : > { %v1187_v7 = vadd.f32 %v1797_v47, %v1612_v60  ;;  %v1181_v0 = vpop.f32.mrb[17].mxu0 }
 0x1fb   : > { %v1182_v55 = vadd.f32 %v1612_v60, %v1181_v0 }
 0x1fc   : > { %1261 = vst [vmem:[%s2924_s16 + $0x8] sm:$0xff] %v1187_v7 }
 0x1fd   : > { %1260 = vst [vmem:[%s2924_s16] sm:$0xff] %v1182_v55 }
 0x200   : > { %v1800_v3 = vpop.f32.mrb[18].mxu0 }
 0x201   : > { %v1197_v44 = vadd.f32 %v1800_v3, %v1612_v60  ;;  %v1191_v35 = vpop.f32.mrb[19].mxu0 }
 0x202   : > { %v1192_v17 = vadd.f32 %v1612_v60, %v1191_v35 }
 0x203   : > { %1263 = vst [vmem:[%s2924_s16 + $0x18] sm:$0xff] %v1197_v44 }
 0x204   : > { %1262 = vst [vmem:[%s2924_s16 + $0x10] sm:$0xff] %v1192_v17 }
 0x206   : > { %v1803_v30 = vpop.f32.mrb[20].mxu0 }
 0x207   : > { %v1207_v11 = vadd.f32 %v1803_v30, %v1612_v60  ;;  %v1201_v12 = vpop.f32.mrb[21].mxu0 }
 0x208   : > { %v1202_v21 = vadd.f32 %v1612_v60, %v1201_v12 }
 0x209   : > { %1265 = vst [vmem:[%s2924_s16 + $0x28] sm:$0xff] %v1207_v11 }
 0x20a   : > { %1264 = vst [vmem:[%s2924_s16 + $0x20] sm:$0xff] %v1202_v21 }
 0x20b   : > { %v1806_v49 = vpop.f32.mrb[22].mxu0 }
 0x20c   : > { %v1217_v5 = vadd.f32 %v1806_v49, %v1612_v60  ;;  %v1211_v16 = vpop.f32.mrb[23].mxu0 }
 0x20d   : > { %v1212_v19 = vadd.f32 %v1612_v60, %v1211_v16 }
 0x20e   : > { %1267 = vst [vmem:[%s2924_s16 + $0x38] sm:$0xff] %v1217_v5 }
 0x20f   : > { %1266 = vst [vmem:[%s2924_s16 + $0x30] sm:$0xff] %v1212_v19 }
 0x212   : > { %v1809_v13 = vpop.f32.mrb[16].mxu1 }
 0x213   : > { %v1227_v22 = vadd.f32 %v1809_v13, %v1612_v60  ;;  %v1221_v53 = vpop.f32.mrb[17].mxu1 }
 0x214   : > { %v1222_v58 = vadd.f32 %v1612_v60, %v1221_v53 }
 0x215   : > { %1269 = vst [vmem:[%s2924_s16 + $0x48] sm:$0xff] %v1227_v22 }
 0x216   : > { %1268 = vst [vmem:[%s2924_s16 + $0x40] sm:$0xff] %v1222_v58 }
 0x219   : > { %v1812_v42 = vpop.f32.mrb[18].mxu1 }
 0x21a   : > { %v1237_v56 = vadd.f32 %v1812_v42, %v1612_v60  ;;  %v1231_v57 = vpop.f32.mrb[19].mxu1 }
 0x21b   : > { %v1232_v38 = vadd.f32 %v1612_v60, %v1231_v57 }
 0x21c   : > { %1271 = vst [vmem:[%s2924_s16 + $0x58] sm:$0xff] %v1237_v56 }
 0x21d   : > { %1270 = vst [vmem:[%s2924_s16 + $0x50] sm:$0xff] %v1232_v38 }
 0x221   : > { %v1815_v20 = vpop.f32.mrb[20].mxu1 }
 0x222   : > { %v1247_v32 = vadd.f32 %v1815_v20, %v1612_v60  ;;  %v1241_v24 = vpop.f32.mrb[21].mxu1 }
 0x223   : > { %v1242_v29 = vadd.f32 %v1612_v60, %v1241_v24 }
 0x224   : > { %1273 = vst [vmem:[%s2924_s16 + $0x68] sm:$0xff] %v1247_v32 }
 0x225   : > { %1272 = vst [vmem:[%s2924_s16 + $0x60] sm:$0xff] %v1242_v29 }
 0x227   : > { %v1818_v61 = vpop.f32.mrb[22].mxu1 }
 0x228   : > { %v1257_v2 = vadd.f32 %v1818_v61, %v1612_v60  ;;  %v1251_v26 = vpop.f32.mrb[23].mxu1 }
 0x229   : > { %v1252_v27 = vadd.f32 %v1612_v60, %v1251_v26 }
 0x22a   : > { %1275 = vst [vmem:[%s2924_s16 + $0x78] sm:$0xff] %v1257_v2 }
 0x22b   : > { %1274 = vst [vmem:[%s2924_s16 + $0x70] sm:$0xff] %v1252_v27 }
 0x22c PF: > { %p1899_p5 = scmp.ge.s32.totalorder %s2120_s20, 2  ;;  %s1412_s1 = sand.u32 1, %s2108_s17  }
 0x22d   : > { %s1413_s4 = scalar_lea.sflag [#allocation3], %s1412_s1 }
 0x22e   : > { %p1890_p11 = pnand %p1899_p5, %p2231_p6 }
 0x230   : > { %2099 = dma.done.wait (!%p1890_p11), %s1413_s4, 2048  }
 0x231   : > { %2101 = vsyncadd (!%p1890_p11), %s1413_s4, 4294965248  ;;  %s3001_s27 = sadd.s32 4294967294, %s2120_s20  }
 0x232   : > { %s1421_s22 = sand.u32 1, %s3001_s27  }
 0x233   : > { %s1422_s26 = scalar_lea.sflag [#allocation5], %s1421_s22 }
 0x234   : > { %2103 = dma.done.wait (!%p1890_p11), %s1422_s26, 4096  }
 0x235   : > { %2105 = vsyncadd (!%p1890_p11), %s1422_s26, 4294963200  ;;  %s3002_s30 = sld [smem:[#allocation9_spill]]  ;;  %p25_p12 = scmp.ge.s32.totalorder %s2212_s23, 4  }
 0x236   : > { %s3003_s17 = smov %s2112_s18  ;;  %s3004_s18 = smov %s2116_s19 }
 0x237   : > { %s3006_s20 = smov %s2212_s23  ;;  %27 = sbr.rel (!%p25_p12) target bundleno = 11 (0xb), region = 134 }
 0x23b   : > { %s3005_s19 = smov %s3002_s30 }
 0x23e   :  { %1436 = vsyncpa [#allocation3], 1 }
 0x23f   :  { %1438 = vsyncpa [#allocation3 + $0x1], 1 }
 0x240   :  { %1439 = vsyncpa [#allocation5], 1 }
 0x241   :  { %1441 = vsyncpa [#allocation5 + $0x1], 1 }

</bundles_post_ra>
